<compile_context>
chip_gen: v7x
topology: tpu7x:2x2x1
jax: 0.10.0
libtpu: 0.0.40
codegen_flags: <defaults>
</compile_context>

<pallas_src>
import jax
import jax.numpy as jnp
from jax.experimental import pallas as pl
from jax.experimental.pallas import tpu as pltpu


def _conv1x1_silu_kernel(x_ref, w_ref, b_ref, o_ref):
    # x_ref: [C, tn]    spatial positions on the lane axis, native dtype
    # w_ref: [4*Co, C]  conv weight, native dtype
    # b_ref: [4*Co, 1]  f32 bias column (broadcast over lanes)
    # o_ref: [4*Co, tn] native dtype output tile
    y = jnp.dot(w_ref[...], x_ref[...], preferred_element_type=jnp.float32)
    y = y + b_ref[...]
    # SiLU: y * sigmoid(y); exp goes to the EUP slot.
    y = y * pl.reciprocal(1.0 + jnp.exp(-y), approx=False)
    o_ref[...] = y.astype(o_ref.dtype)


class Upsample:
    """JAX/Pallas port of maskbit_pytorch Upsample (1x1 conv + SiLU + PixelShuffle(2))."""

    def __init__(self, dim, dim_out=None, *, key):
        dim_out = dim if dim_out is None else dim_out
        self.dim = int(dim)
        self.dim_out = int(dim_out)

        # init_conv_: kaiming_uniform_ (a=0 -> bound = sqrt(6/fan_in), fan_in = dim)
        # on [dim_out, dim, 1, 1], repeated 'o ... -> (o 4) ...' (oc = o*4 + r),
        # zero bias.  maskbit's init_conv_ overrides torch Conv2d's default reset.
        bound = (6.0 / float(dim)) ** 0.5
        w_base = jax.random.uniform(
            key, (self.dim_out, self.dim), minval=-bound, maxval=bound,
            dtype=jnp.float32)
        self.weight = jnp.repeat(w_base, 4, axis=0)        # [4*Co, C]
        self.bias = jnp.zeros((4 * self.dim_out, 1), jnp.float32)

    # ---- tiling -----------------------------------------------------------

    def _pick_tile(self, n_spatial, batch, itemsize):
        """Spatial (lane) tile width + vmem limit from a per-generation-safe budget."""
        c, f = self.dim, 4 * self.dim_out
        # Weight/bias have a constant index_map (DMA'd once) but default buffering
        # still allocates two VMEM copies -> account for 2x.
        weight_vmem = 2 * f * c * itemsize + 2 * f * 4
        budget = 24 << 20                       # fits v5e/v6e/v7x scoped VMEM
        avail = max(budget - weight_vmem, 2 << 20)
        tn = avail // (2 * (c + f) * itemsize)  # double-buffered x-tile + out-tile
        tn = max(128, min(8192, (tn // 128) * 128))
        if tn >= n_spatial:
            tn = n_spatial                      # single full-extent spatial block
        if batch * pl.cdiv(n_spatial, tn) < 2 and n_spatial > 128:
            # keep >= 2 grid steps so v7x's two TensorCores both get work
            tn = max(128, ((n_spatial // 2) // 128) * 128)
        vmem_need = weight_vmem + 2 * (c + f) * tn * itemsize
        vmem_limit = max(vmem_need + (2 << 20), 8 << 20)
        return int(tn), int(vmem_limit)

    # ---- forward ----------------------------------------------------------

    def __call__(self, x):
        # x: [B, C, H, W]  (NCHW, matching the torch module)
        b, c, h, w = x.shape
        assert c == self.dim
        co = self.dim_out
        f = 4 * co
        s = h * w

        xs = x.reshape(b, c, s)                 # free: no NCHW->NHWC transpose
        wt = self.weight.astype(x.dtype)        # one tiny cast -> MXU-native operands
        tn, vmem_limit = self._pick_tile(s, b, jnp.dtype(x.dtype).itemsize)

        y = pl.pallas_call(
            _conv1x1_silu_kernel,
            out_shape=jax.ShapeDtypeStruct((b, f, s), x.dtype),
            grid_spec=pltpu.PrefetchScalarGridSpec(
                num_scalar_prefetch=0,
                grid=(b, pl.cdiv(s, tn)),
                in_specs=[
                    pl.BlockSpec((None, c, tn), lambda bi, si: (bi, 0, si)),  # x tile
                    pl.BlockSpec((f, c), lambda bi, si: (0, 0)),              # weight
                    pl.BlockSpec((f, 1), lambda bi, si: (0, 0)),              # bias
                ],
                out_specs=pl.BlockSpec((None, f, tn), lambda bi, si: (bi, 0, si)),
            ),
            compiler_params=pltpu.CompilerParams(
                dimension_semantics=("parallel", "parallel"),
                vmem_limit_bytes=vmem_limit),
        )(xs, wt, self.bias)

        # PixelShuffle(2): conv channel oc = co*4 + 2*i + j -> out[b, co, 2h+i, 2w+j]
        y = y.reshape(b, co, 2, 2, h, w)
        y = jnp.transpose(y, (0, 1, 4, 2, 5, 3))        # [B, Co, H, 2, W, 2]
        return y.reshape(b, co, 2 * h, 2 * w)


def _reference(x, weight, bias, dim_out):
    """Pure-JAX f32 reference: 1x1 conv + SiLU + PixelShuffle(2)."""
    b, c, h, w = x.shape
    y = jnp.einsum('oc,bchw->bohw', weight.astype(jnp.float32),
                   x.astype(jnp.float32))
    y = y + bias.reshape(1, -1, 1, 1)
    y = jax.nn.silu(y)
    y = y.reshape(b, dim_out, 2, 2, h, w)
    y = jnp.transpose(y, (0, 1, 4, 2, 5, 3))
    return y.reshape(b, dim_out, 2 * h, 2 * w)


if __name__ == "__main__":
    key = jax.random.PRNGKey(0)
    k_x, k_w = jax.random.split(key)

    B, C, H, W = 2, 4, 16, 16          # dim = 4, dim_out defaults to 4
    x = jax.random.normal(k_x, (B, C, H, W), dtype=jnp.float32)

    module = Upsample(dim=C, key=k_w)

    out = jax.block_until_ready(module(x))
    assert out.shape == (B, module.dim_out, 2 * H, 2 * W), out.shape
    assert out.dtype == x.dtype, out.dtype

    ref = jax.block_until_ready(
        _reference(x, module.weight, module.bias, module.dim_out))
    err = float(jnp.max(jnp.abs(out.astype(jnp.float32) - ref)))
    assert err < 1e-4, f"max abs error {err}"

    print("KERNEL_OK")
</pallas_src>

<mosaic_0001>
module attributes {stable_mosaic.version = 11 : i64} {
  func.func @_conv1x1_silu_kernel(%arg0: i32, %arg1: i32, %arg2: memref<1x4x256xf32, #tpu.memory_space<vmem>>, %arg3: memref<16x4xf32, #tpu.memory_space<vmem>>, %arg4: memref<16x1xf32, #tpu.memory_space<vmem>>, %arg5: memref<1x16x256xf32, #tpu.memory_space<vmem>>) attributes {dimension_semantics = [#tpu.dimension_semantics<parallel>, #tpu.dimension_semantics<parallel>], iteration_bounds = array<i64: 2, 1>, scalar_prefetch = 0 : i64, scratch_operands = 0 : i64, tpu.core_type = #tpu.core_type<tc>, window_params = [{transform_indices = @transform_0, window_bounds = array<i64: 1, 4, 256>}, {pipeline_mode = #tpu.pipeline_mode<synchronous>, transform_indices = @transform_1, window_bounds = array<i64: 16, 4>}, {pipeline_mode = #tpu.pipeline_mode<synchronous>, transform_indices = @transform_2, window_bounds = array<i64: 16, 1>}, {transform_indices = @transform_3, window_bounds = array<i64: 1, 16, 256>}]} {
    %c0 = arith.constant 0 : index
    %c0_0 = arith.constant 0 : index
    %0 = vector.load %arg3[%c0, %c0_0] : memref<16x4xf32, #tpu.memory_space<vmem>>, vector<16x4xf32>
    %c0_1 = arith.constant 0 : index
    %c0_2 = arith.constant 0 : index
    %c0_3 = arith.constant 0 : index
    %1 = vector.load %arg2[%c0_1, %c0_2, %c0_3] : memref<1x4x256xf32, #tpu.memory_space<vmem>>, vector<1x4x256xf32>
    %2 = vector.shape_cast %1 : vector<1x4x256xf32> to vector<4x256xf32>
    %cst = arith.constant dense<0.000000e+00> : vector<16x256xf32>
    %3 = tpu.matmul %0, %2, %cst {dimension_numbers = #tpu.dot_dimension_numbers<[1], [0], [0], [1], [0, 0, 1, 1], [], []>} : vector<16x4xf32>, vector<4x256xf32>, vector<16x256xf32> -> vector<16x256xf32>
    %c0_4 = arith.constant 0 : index
    %c0_5 = arith.constant 0 : index
    %4 = vector.load %arg4[%c0_4, %c0_5] : memref<16x1xf32, #tpu.memory_space<vmem>>, vector<16x1xf32>
    %5 = vector.broadcast %4 : vector<16x1xf32> to vector<16x256xf32>
    %6 = arith.addf %3, %5 : vector<16x256xf32>
    %cst_6 = arith.constant 0.000000e+00 : f32
    %7 = vector.broadcast %cst_6 : f32 to vector<16x256xf32>
    %8 = arith.subf %7, %6 : vector<16x256xf32>
    %9 = math.exp %8 : vector<16x256xf32>
    %cst_7 = arith.constant 1.000000e+00 : f32
    %10 = vector.broadcast %cst_7 : f32 to vector<16x256xf32>
    %11 = arith.addf %10, %9 : vector<16x256xf32>
    %12 = tpu.reciprocal %11 : vector<16x256xf32> -> vector<16x256xf32>
    %13 = arith.mulf %6, %12 : vector<16x256xf32>
    %c0_8 = arith.constant 0 : index
    %c0_9 = arith.constant 0 : index
    %c0_10 = arith.constant 0 : index
    %14 = vector.load %arg5[%c0_8, %c0_9, %c0_10] : memref<1x16x256xf32, #tpu.memory_space<vmem>>, vector<1x16x256xf32>
    %15 = vector.shape_cast %14 : vector<1x16x256xf32> to vector<16x256xf32>
    %16 = vector.shape_cast %13 : vector<16x256xf32> to vector<1x16x256xf32>
    tpu.vector_store %arg5[%c0_8, %c0_9, %c0_10], %16 {strides = array<i32>} : memref<1x16x256xf32, #tpu.memory_space<vmem>>, vector<1x16x256xf32>,
    return
  }
  func.func @transform_0(%arg0: i32, %arg1: i32) -> (i32, i32, i32) {
    %c0_i32 = arith.constant 0 : i32
    %c0_i32_0 = arith.constant 0 : i32
    return %arg0, %c0_i32, %arg1 : i32, i32, i32
  }
  func.func @transform_1(%arg0: i32, %arg1: i32) -> (i32, i32) {
    %c0_i32 = arith.constant 0 : i32
    %c0_i32_0 = arith.constant 0 : i32
    %c0_i32_1 = arith.constant 0 : i32
    return %c0_i32, %c0_i32_0 : i32, i32
  }
  func.func @transform_2(%arg0: i32, %arg1: i32) -> (i32, i32) {
    %c0_i32 = arith.constant 0 : i32
    %c0_i32_0 = arith.constant 0 : i32
    %c0_i32_1 = arith.constant 0 : i32
    return %c0_i32, %c0_i32_0 : i32, i32
  }
  func.func @transform_3(%arg0: i32, %arg1: i32) -> (i32, i32, i32) {
    %c0_i32 = arith.constant 0 : i32
    %c0_i32_0 = arith.constant 0 : i32
    return %arg0, %c0_i32, %arg1 : i32, i32, i32
  }
}

</mosaic_0001>

<bundles_post_ra>
// kernel: tpu_custom_call.1
= control target key start
LH: loop header
LB: loop body
LE: loop exit
PB: predicated region body
PF: predicated region fallthrough
CT: control target
= control target key end

     0   :  { %8 = vsyncpa [#allocation3], 0  ;;  %s759_s0 = inlined_call_operand.vmem [shape: f32[2,4,256], index: 0, kind: input, shape index: {}]   ;;  %s760_s1 = inlined_call_operand.vmem [shape: f32[16,4], index: 1, kind: input, shape index: {}]   ;;  %s761_s2 = inlined_call_operand.vmem [shape: f32[16,1], index: 2, kind: input, shape index: {}]   ;;  %s762_s3 = inlined_call_operand.hbm [shape: f32[2,16,256], index: 3, kind: output, shape index: {}]  }
   0x1   :  { %10 = vsyncpa [#allocation3 + $0x1], 0  ;;  %s632_s12 = smov 0   ;;  %s634_s13 = smov 0  }
   0x2   :  { %s636_s14 = smov 0   ;;  %s638_s15 = smov 0  }
   0x3   :  { %s640_s16 = smov 0   ;;  %s642_s17 = smov 0  }
   0x4 LB: > { %s429_s18 = sadd.s32 4294967295, %s605_s17   ;;  %s430_s19 = sadd.s32 4294967294, %s605_s17   ;;  %s605_s17 = sphi %s642_s17, %s16_s17   ;;  %s601_s16 = sphi %s640_s16, %s769_s16   ;;  %s597_s15 = sphi %s638_s15, %s768_s15   ;;  %s593_s14 = sphi %s636_s14, %s767_s14   ;;  %s589_s13 = sphi %s634_s13, %s766_s13   ;;  %s585_s12 = sphi %s632_s12, %s765_s12  }
   0x5   : > { %s28_s20 = sadd.s32 1, %s601_s16  ;;  %s107_s21 = sadd.s32 1, %s593_s14 }
   0x6   : > { %p30_p0 = scmp.ge.s32.totalorder %s28_s20, 2  ;;  %p117_p1 = scmp.ne.s32.totalorder %s593_s14, %s589_s13 }
   0x7   : > { %p118_p2 = scmp.eq.s32.totalorder %s429_s18, 1  ;;  %p123_p3 = scmp.ne.s32.totalorder %s589_s13, %s585_s12 }
   0x8   : > { %s771_s20 = smov (%p30_p0, %s28_s20), 0  ;;  %p124_p5 = scmp.eq.s32.totalorder %s430_s19, 1 }
   0x9   : > { %p672_p4 = por %p118_p2, %p117_p1  ;;  %s102_s23 = ssub.s32 %s601_s16, %s771_s20 }
   0xa   : > { %p433_p6 = scmp.ge.s32.totalorder %s605_s17, 1  ;;  %p105_p7 = scmp.eq.s32.totalorder %s102_s23, 0 }
   0xb   : > { %p679_p8 = por %p124_p5, %p123_p3  ;;  %p161_p9 = scmp.lt.s32.totalorder %s605_s17, 3 }
   0xc   : > { %s685_s25 = scalar_select %p105_p7, %s593_s14, %s107_s21  }
   0xd   : > { %p162_p10 = pnand %p433_p6, %p161_p9 }
   0xe   : > { %p190_p11 = scmp.lt.s32.totalorder (!%p162_p10), %s597_s15, 1  ;;  %v607_v0 = vmov (!%p162_p10), 0.0   ;;  %v203_v1 = vld [vmem:[%s761_s2] sm:$0xff] (!%p162_p10)  ;;  %v608_v2 = vmov (!%p162_p10), 0   ;;  %v204_v3 = vld [vmem:[%s761_s2 + $0x8] sm:$0xff] (!%p162_p10)  ;;  %vm224_vm0 = vcmask (!%p162_p10), 1043456  }
   0xf   : > { %165 = sbr.rel (%p162_p10) target bundleno = 293 (0x125), region = 32  ;;  %293 = vmatprep.mubr.f32.mxu0 (!%p162_p10), %v607_v0  ;;  %299 = vmatprep.mubr.f32.mxu1 (!%p162_p10), %v607_v0  ;;  %v200_v6 = vld [vmem:[%s760_s1] sm:$0xff] (!%p162_p10)  ;;  %vm217_vm1 = vcmask (!%p162_p10), 31744   ;;  %v201_v7 = vld [vmem:[%s760_s1 + $0x8] sm:$0xff] (!%p162_p10)  ;;  %s186_s18 = sand.u32 (!%p162_p10), 1, %s589_s13  }
  0x10   : > { %509 = vset.pattern.permute.xlu0 (!%p162_p10), %v608_v2  ;;  %s434_s19 = sshll.u32 (!%p162_p10), %s186_s18, 5  ;;  %s447_s26 = sshll.u32 (!%p162_p10), %s597_s15, 9 }
  0x11   : > { %207 = vperm.xlu0 (!%p162_p10), %509, %v203_v1   ;;  %s188_s21 = scalar_lea.vmem (!%p162_p10), [#allocation2], %s434_s19  ;;  %s609_s4 = smov (!%p162_p10), [#allocation2]  }
  0x12   : > { %s350_s23 = sshll.u32 (!%p162_p10), %s188_s21, 4  ;;  %s531_s5 = sshll.u32 (!%p162_p10), %s609_s4, 4  ;;  %s706_s23 = int_to_ptr.vmem [resolvable:$true] %s350_s23  ;;  %s532_s5 = int_to_ptr.vmem [resolvable:$false] %s531_s5 }
  0x13   : > { %s527_s30 = scalar_lea.vmem (!%p162_p10), %s706_s23, 512  ;;  %s533_s6 = scalar_lea.vmem (!%p162_p10), %s532_s5, 1024 }
  0x14   : > { %p528_p12 = scmp.ne.s32.totalorder (!%p162_p10), %s706_s23, %s527_s30  ;;  %p534_p1 = scmp.lt.s32.totalorder (!%p162_p10), %s706_s23, %s532_s5 }
  0x15   : > { %212 = vperm.xlu0 (!%p162_p10), %509, %v204_v3   ;;  %p535_p2 = scmp.lt.s32.totalorder (!%p162_p10), %s533_s6, %s527_s30 }
  0x16   : > { %s191_s28 = scalar_select %p190_p11, %s597_s15, 1 }
  0x17   : > { %s713_s15 = scalar_lea.sflag [#allocation3], %s186_s18  ;;  %p529_p13 = pnand %p528_p12, %p672_p4 }
  0x18   : > { %s446_s29 = sshll.u32 %s191_s28, 3  ;;  %p536_p3 = por %p535_p2, %p534_p1 }
  0x19   : > { %s197_s7 = scalar_lea.vmem %s759_s0, %s446_s29  ;;  %s711_s29 = scalar_lea.hbm %s762_s3, %s447_s26 }
  0x1a   : > { %v202_v4 = vld [vmem:[%s197_s7] sm:$0xff]  ;;  %p530_p0 = pneg %p529_p13 }
  0x1b   : > { %v216_v5 = vcombine.high %v202_v4, %v202_v4 }
  0x1c   : > { %p537_p5 = pnand %p536_p3, %p530_p0 }
  0x1d   : > { %437 = vmatprep.subr.msk.mxu0 %vm224_vm0, %v216_v5  ;;  %448 = vmatprep.subr.msk.mxu1 %vm224_vm0, %v216_v5 }
  0x1e   : > { %438 = vmatpush1.msk.msra.mxu0 %vm224_vm0, %v202_v4  ;;  %449 = vmatpush1.msk.msra.mxu1 %vm224_vm0, %v202_v4 }
  0x1f   : > { %439 = vmatmul.mubr.msk.f32.vlgmr.msra.gmra.mrb[0].mxu0 %vm217_vm1, %v200_v6  ;;  %440 = vmatmul.mubr.msk.f32.vlgmr.msra.gmra.mrb[0].mxu1 %vm217_vm1, %v201_v7 }
  0x90   : > { %v208_v8 = vpop.permute.xlu0 %207 }
  0x94   : > { %v213_v9 = vpop.permute.xlu0 %212 }
  0xf2   : > { %v295_v10 = vpop.f32.mrb[0].mxu0  ;;  %v301_v11 = vpop.f32.mrb[0].mxu1 }
  0xf3   : > { %v296_v12 = vadd.f32 %v295_v10, %v208_v8  ;;  %v302_v13 = vadd.f32 %v301_v11, %v213_v9  ;;  %v297_v14 = vpop.f32.mrb[1].mxu0  ;;  %v303_v15 = vpop.f32.mrb[1].mxu1 }
  0xf4   : > { %v298_v16 = vadd.f32 %v297_v14, %v208_v8  ;;  %v304_v17 = vadd.f32 %v303_v15, %v213_v9 }
  0xf5   : > { %v306_v18 = vsub.f32 0.0, %v296_v12  ;;  %v308_v19 = vsub.f32 0.0, %v302_v13 }
  0xf6   : > { %v307_v20 = vsub.f32 0.0, %v298_v16  ;;  %v309_v21 = vsub.f32 0.0, %v304_v17 }
  0xf7   : > { %v310_v22 = vmul.f32 1.442695, %v306_v18  ;;  %v314_v23 = vmul.f32 1.442695, %v308_v19 }
  0xf8   : > { %v312_v24 = vmul.f32 1.442695, %v307_v20  ;;  %v316_v25 = vmul.f32 1.442695, %v309_v21 }
  0xf9   : > { %511 = vpow2.f32 %v310_v22 }
  0xfa   : > { %513 = vpow2.f32 %v314_v23 }
  0xfb   : > { %515 = vpow2.f32 %v312_v24 }
  0xfc   : > { %517 = vpow2.f32 %v316_v25 }
 0x103   : > { %v512_v26 = vpop.eup %511 }
 0x104   : > { %v514_v27 = vpop.eup %513  ;;  %v318_v28 = vadd.f32 1.0, %v512_v26 }
 0x105   : > { %v516_v29 = vpop.eup %515  ;;  %v320_v30 = vadd.f32 1.0, %v514_v27 }
 0x106   : > { %v518_v31 = vpop.eup %517  ;;  %519 = vrcp.f32 %v318_v28  ;;  %v319_v32 = vadd.f32 1.0, %v516_v29 }
 0x107   : > { %521 = vrcp.f32 %v320_v30  ;;  %v321_v33 = vadd.f32 1.0, %v518_v31 }
 0x108   : > { %523 = vrcp.f32 %v319_v32 }
 0x109   : > { %525 = vrcp.f32 %v321_v33 }
 0x110   : > { %v520_v34 = vpop.eup %519 }
 0x111   : > { %v522_v35 = vpop.eup %521  ;;  %v326_v36 = vmul.f32 %v520_v34, %v296_v12 }
 0x112   : > { %v524_v37 = vpop.eup %523  ;;  %v328_v38 = vmul.f32 %v522_v35, %v302_v13 }
 0x113   : > { %v526_v39 = vpop.eup %525  ;;  %330 = vst [vmem:[%s188_s21] sm:$0xff] %v326_v36  ;;  %v327_v40 = vmul.f32 %v524_v37, %v298_v16 }
 0x114   : > { %332 = vst [vmem:[%s188_s21 + $0x10] sm:$0xff] %v328_v38  ;;  %v329_v41 = vmul.f32 %v526_v39, %v304_v17 }
 0x115   : > { %331 = vst [vmem:[%s188_s21 + $0x8] sm:$0xff] %v327_v40 }
 0x116   : > { %333 = vst [vmem:[%s188_s21 + $0x18] sm:$0xff] %v329_v41 }
 0x117   : > { %540 = shalt.err (!%p537_p5)
}
 0x118   : > { %s541_s7 = scalar_lea.hbm %s711_s29, 512  ;;  %s545_s10 = scalar_lea.hbm %s762_s3, 1024 }
 0x119   : > { %p542_p6 = scmp.ne.s32.totalorder %s711_s29, %s541_s7  ;;  %p546_p10 = scmp.lt.u32.totalorder %s711_s29, %s762_s3 }
 0x11a   : > { %p547_p11 = scmp.lt.u32.totalorder %s545_s10, %s541_s7  ;;  %p549_p13 = scmp.lt.u32.totalorder %s541_s7, %s711_s29 }
 0x11b   : > { %p543_p7 = pnand %p542_p6, %p672_p4 }
 0x11c   : > { %p548_p12 = por %p547_p11, %p546_p10 }
 0x11d   : > { %p544_p9 = pneg %p543_p7 }
 0x11e   : > { %p550_p0 = por %p549_p13, %p548_p12 }
 0x120   : > { %p551_p1 = pnand %p550_p0, %p544_p9 }
 0x122   : > { %554 = shalt.err (!%p551_p1)
}
 0x123   : > { %s610_s19 = smov 256   ;;  %s611_s21 = smov 16  }
 0x124   : > { %450 = dma.vmem_to_hbm [thread:$0]  (%p672_p4), %s706_s23, 512, %s711_s29, %s713_s15, %s610_s19, %s610_s19, %s611_s21  }
 0x125 PF: > { %p456_p2 = scmp.ge.s32.totalorder %s605_s17, 2  ;;  %s365_s26 = sand.u32 1, %s585_s12  }
 0x126   : > { %s366_s27 = scalar_lea.sflag [#allocation3], %s365_s26 }
 0x127   : > { %p453_p3 = pnand %p456_p2, %p679_p8 }
 0x129   : > { %580 = dma.done.wait (!%p453_p3), %s366_s27, 512  }
 0x12a   : > { %582 = vsyncadd (!%p453_p3), %s366_s27, 4294966784  ;;  %s16_s17 = sadd.s32 1, %s605_s17   ;;  %s765_s12 = smov %s589_s13 }
 0x12b   : > { %p13_p5 = scmp.ge.s32.totalorder %s16_s17, 4   ;;  %s766_s13 = smov %s593_s14 }
 0x12c   : > { %s767_s14 = smov %s685_s25  ;;  %s768_s15 = smov %s601_s16 }
 0x12d   : > { %s769_s16 = smov %s771_s20  ;;  %15 = sbr.rel (!%p13_p5) target bundleno = 4 (0x4), region = 67 }
 0x134   :  { %371 = vsyncpa [#allocation3], 1 }
 0x135   :  { %373 = vsyncpa [#allocation3 + $0x1], 1 }

</bundles_post_ra>
